<compile_context>
chip_gen: v6e
topology: v6e:2x2x1
jax: 0.10.0
libtpu: 0.0.40
codegen_flags: <defaults>
</compile_context>

<pallas_src>
import math

import jax
import jax.numpy as jnp
from jax.experimental import pallas as pl
from jax.experimental.pallas import tpu as pltpu


def _sinusoidal_kernel(x_ref, freqs_ref, o_ref):
    # x_ref: (TB, 1) f32, freqs_ref: (1, half) f32, o_ref: (TB, 2, half) f32
    #
    # Recompute the broadcast multiply for each half instead of keeping a
    # (TB, half) temporary live across both transcendentals (multiply is ~1
    # VALU op/element vs ~30 for sin/cos, so this is free and avoids spills).
    # Each store is a full-width slab store at offset 0 of its own (TB, half)
    # slab -> no masked store at lane offset `half`.
    o_ref[:, 0, :] = jnp.sin(x_ref[...] * freqs_ref[...])
    o_ref[:, 1, :] = jnp.cos(x_ref[...] * freqs_ref[...])
    # NOTE: if this ever becomes a hot loop, a hand-rolled shared-range-
    # reduction sincos would cut ~30-40% of the VALU work (sin/cos dominate).


def _round_up(n: int, m: int) -> int:
    return ((n + m - 1) // m) * m


def _choose_block_rows(batch: int, half: int, *, max_rows: int = 1024,
                       vmem_budget_bytes: int = 6 * 1024 * 1024) -> int:
    """Pick rows-per-tile: multiple of 8, >=2 grid steps when batch >= 16, and
    double-buffered blocks inside a conservative VMEM budget (budget is on the
    dense block bytes; ~4x headroom is left for possible sublane padding of the
    size-2 middle dim, keeping one code path safe on v5e/v6e/v7x)."""
    tb = _round_up(max(pl.cdiv(batch, 2), 1), 8)
    tb = max(8, min(tb, max_rows, _round_up(batch, 8)))

    lane_half = _round_up(half, 128)

    def dense_vmem_bytes(t: int) -> int:
        out_blk = t * 2 * lane_half * 4     # (t, 2, half) output block
        x_blk = t * 128 * 4                 # (t, 1) x block, lane-padded
        return 2 * (out_blk + x_blk)        # double-buffered

    while tb > 8 and dense_vmem_bytes(tb) > vmem_budget_bytes:
        tb = max(8, _round_up(tb // 2, 8))
    return tb


def sinusoidal_pos_emb(x: jax.Array, dim: int, theta: float = 10000.0) -> jax.Array:
    """x: (B,) float positions/timesteps -> (B, dim) f32 embedding."""
    assert dim % 2 == 0, "dim must be even"
    # dim == 2 would divide by zero (half - 1 == 0); PyTorch silently does the
    # same — we require dim >= 4 instead of reproducing the div-by-zero.
    assert dim >= 4, "dim must be >= 4"
    half = dim // 2
    batch = x.shape[0]

    # Frequency table hoisted out of the kernel: computed once with the same
    # f32 ops as the reference (bit-identical values), stays resident in VMEM.
    scale = math.log(theta) / (half - 1)
    freqs = jnp.exp(-scale * jnp.arange(half, dtype=jnp.float32)).reshape(1, half)

    x2d = x.astype(jnp.float32).reshape(batch, 1)

    tb = _choose_block_rows(batch, half)
    # No padding and no trailing out[:B] slice: Pallas masks the ragged last
    # block, so output HBM traffic is written exactly once.
    grid = (pl.cdiv(batch, tb),)

    cost = pl.CostEstimate(
        flops=batch * dim,                   # broadcast multiplies
        transcendentals=batch * dim,         # one sin or cos per output element
        bytes_accessed=batch * 4 + half * 4 + batch * dim * 4,
    )

    out = pl.pallas_call(
        _sinusoidal_kernel,
        out_shape=jax.ShapeDtypeStruct((batch, 2, half), jnp.float32),
        grid=grid,
        in_specs=[
            pl.BlockSpec((tb, 1), lambda i: (i, 0)),        # x row tile
            pl.BlockSpec((1, half), lambda i: (0, 0)),      # resident freqs
        ],
        out_specs=pl.BlockSpec((tb, 2, half), lambda i: (i, 0, 0)),
        compiler_params=pltpu.CompilerParams(
            dimension_semantics=("parallel",),
        ),
        cost_estimate=cost,
    )(x2d, freqs)

    # (B, 2, half) -> (B, dim) is a contiguous, free reshape: each row is
    # already laid out as [sin(half) | cos(half)], matching the PyTorch concat.
    return out.reshape(batch, dim)


def _reference(x, dim, theta=10000.0):
    half = dim // 2
    emb = math.log(theta) / (half - 1)
    emb = jnp.exp(jnp.arange(half, dtype=jnp.float32) * -emb)
    emb = x.astype(jnp.float32)[:, None] * emb[None, :]
    return jnp.concatenate([jnp.sin(emb), jnp.cos(emb)], axis=-1)


if __name__ == "__main__":
    key = jax.random.PRNGKey(0)
    B, DIM = 8, 32
    # timesteps-like scalar inputs
    x = jax.random.uniform(key, (B,), dtype=jnp.float32, minval=0.0, maxval=1000.0)

    out = sinusoidal_pos_emb(x, DIM)
    out = jax.block_until_ready(out)

    ref = _reference(x, DIM)
    assert out.shape == (B, DIM)
    assert jnp.allclose(out, ref, atol=1e-5, rtol=1e-5), "mismatch vs reference"

    # Non-tile-multiple batch: exercises the ragged (masked) last grid block.
    B2 = 13
    x2 = jax.random.uniform(jax.random.PRNGKey(1), (B2,), dtype=jnp.float32,
                            minval=0.0, maxval=1000.0)
    out2 = jax.block_until_ready(sinusoidal_pos_emb(x2, DIM))
    assert out2.shape == (B2, DIM)
    assert jnp.allclose(out2, _reference(x2, DIM), atol=1e-5, rtol=1e-5)

    print("KERNEL_OK")
</pallas_src>

<mosaic_0001>
module attributes {stable_mosaic.version = 11 : i64} {
  func.func @_sinusoidal_kernel(%arg0: i32, %arg1: memref<8x1xf32, #tpu.memory_space<vmem>>, %arg2: memref<1x16xf32, #tpu.memory_space<vmem>>, %arg3: memref<8x2x16xf32, #tpu.memory_space<vmem>>) attributes {dimension_semantics = [#tpu.dimension_semantics<parallel>], iteration_bounds = array<i64: 1>, scalar_prefetch = 0 : i64, scratch_operands = 0 : i64, tpu.core_type = #tpu.core_type<tc>, window_params = [{transform_indices = @transform_0, window_bounds = array<i64: 8, 1>}, {pipeline_mode = #tpu.pipeline_mode<synchronous>, transform_indices = @transform_1, window_bounds = array<i64: 1, 16>}, {transform_indices = @transform_2, window_bounds = array<i64: 8, 2, 16>}]} {
    %c0 = arith.constant 0 : index
    %c0_0 = arith.constant 0 : index
    %0 = vector.load %arg1[%c0, %c0_0] : memref<8x1xf32, #tpu.memory_space<vmem>>, vector<8x1xf32>
    %c0_1 = arith.constant 0 : index
    %c0_2 = arith.constant 0 : index
    %1 = vector.load %arg2[%c0_1, %c0_2] : memref<1x16xf32, #tpu.memory_space<vmem>>, vector<1x16xf32>
    %2 = vector.broadcast %0 : vector<8x1xf32> to vector<8x16xf32>
    %3 = vector.broadcast %1 : vector<1x16xf32> to vector<8x16xf32>
    %4 = arith.mulf %2, %3 : vector<8x16xf32>
    %5 = math.sin %4 : vector<8x16xf32>
    %c0_3 = arith.constant 0 : index
    %c0_4 = arith.constant 0 : index
    %c0_5 = arith.constant 0 : index
    %6 = vector.load %arg3[%c0_3, %c0_4, %c0_5] : memref<8x2x16xf32, #tpu.memory_space<vmem>>, vector<8x1x16xf32>
    %7 = vector.shape_cast %6 : vector<8x1x16xf32> to vector<8x16xf32>
    %8 = vector.shape_cast %5 : vector<8x16xf32> to vector<8x1x16xf32>
    tpu.vector_store %arg3[%c0_3, %c0_4, %c0_5], %8 {strides = array<i32>} : memref<8x2x16xf32, #tpu.memory_space<vmem>>, vector<8x1x16xf32>,
    %c0_6 = arith.constant 0 : index
    %c0_7 = arith.constant 0 : index
    %9 = vector.load %arg1[%c0_6, %c0_7] : memref<8x1xf32, #tpu.memory_space<vmem>>, vector<8x1xf32>
    %c0_8 = arith.constant 0 : index
    %c0_9 = arith.constant 0 : index
    %10 = vector.load %arg2[%c0_8, %c0_9] : memref<1x16xf32, #tpu.memory_space<vmem>>, vector<1x16xf32>
    %11 = vector.broadcast %9 : vector<8x1xf32> to vector<8x16xf32>
    %12 = vector.broadcast %10 : vector<1x16xf32> to vector<8x16xf32>
    %13 = arith.mulf %11, %12 : vector<8x16xf32>
    %14 = math.cos %13 : vector<8x16xf32>
    %c0_10 = arith.constant 0 : index
    %c1 = arith.constant 1 : index
    %c0_11 = arith.constant 0 : index
    %15 = vector.load %arg3[%c0_10, %c1, %c0_11] : memref<8x2x16xf32, #tpu.memory_space<vmem>>, vector<8x1x16xf32>
    %16 = vector.shape_cast %15 : vector<8x1x16xf32> to vector<8x16xf32>
    %17 = vector.shape_cast %14 : vector<8x16xf32> to vector<8x1x16xf32>
    tpu.vector_store %arg3[%c0_10, %c1, %c0_11], %17 {strides = array<i32>} : memref<8x2x16xf32, #tpu.memory_space<vmem>>, vector<8x1x16xf32>,
    return
  }
  func.func @transform_0(%arg0: i32) -> (i32, i32) {
    %c0_i32 = arith.constant 0 : i32
    %c0_i32_0 = arith.constant 0 : i32
    return %arg0, %c0_i32 : i32, i32
  }
  func.func @transform_1(%arg0: i32) -> (i32, i32) {
    %c0_i32 = arith.constant 0 : i32
    %c0_i32_0 = arith.constant 0 : i32
    %c0_i32_1 = arith.constant 0 : i32
    return %c0_i32, %c0_i32_0 : i32, i32
  }
  func.func @transform_2(%arg0: i32) -> (i32, i32, i32) {
    %c0_i32 = arith.constant 0 : i32
    %c0_i32_0 = arith.constant 0 : i32
    %c0_i32_1 = arith.constant 0 : i32
    return %arg0, %c0_i32, %c0_i32_0 : i32, i32, i32
  }
}

</mosaic_0001>

<bundles_post_ra>
// kernel: tpu_custom_call.1
= control target key start
LH: loop header
LB: loop body
LE: loop exit
PB: predicated region body
PF: predicated region fallthrough
CT: control target
= control target key end

     0   :  { %v456_v1 = vmov 0   ;;  %s580_s0 = inlined_call_operand.vmem [shape: f32[8,1], index: 0, kind: input, shape index: {}]   ;;  %s581_s1 = inlined_call_operand.vmem [shape: f32[1,16], index: 1, kind: input, shape index: {}]   ;;  %s582_s2 = inlined_call_operand.hbm [shape: f32[8,2,16], index: 2, kind: output, shape index: {}]  }
   0x1   :  { %v12_v0 = vld [vmem:[%s580_s0] sm:$0xff]  ;;  %425 = vset.pattern.permute.xlu0 %v456_v1 }
   0x2   :  { %16 = vperm.xlu0 %425, %v12_v0  }
   0x3   :  { %7 = vsyncpa [#allocation3], 0  ;;  %v396_v2 = vld [vmem:[%s581_s1] ss:$0 sm:$0xff]  ;;  %v457_v23 = vmov 683565275  }
   0x4   :  { %v458_v27 = vmov 2475754826   ;;  %v459_v29 = vmov 2131351028   ;;  %v460_v31 = vmov 2102212464  }
   0x5   :  { %v461_v33 = vmov 920167782   ;;  %v462_v40 = vmov 1326507024   ;;  %s464_s0 = smov [#allocation2]  }
   0x6   :  { %201 = vperm.xlu0 %425, %v12_v0   ;;  %s385_s1 = sshll.u32 %s464_s0, 4  ;;  %s386_s1 = int_to_ptr.vmem [resolvable:$true] %s385_s1 }
   0x7   :  { %s434_s13 = scalar_lea.vmem %s386_s1, 256  ;;  %p439_p1 = scmp.lt.s32.totalorder %s386_s1, %s386_s1 }
   0x8   :  { %p435_p0 = scmp.ne.s32.totalorder %s386_s1, %s434_s13  ;;  %p440_p2 = scmp.lt.s32.totalorder %s434_s13, %s434_s13 }
   0xa   :  { %p441_p3 = por %p440_p2, %p439_p1 }
   0xc   :  { %p442_p4 = pnand %p441_p3, %p435_p0 }
  0x7d   :  { %v17_v3 = vpop.permute.xlu0 %16 }
  0x7e   :  { %v488_v4 = vmul.f32 %v396_v2, %v17_v3 }
  0x80   :  { %v26_v5 = vand.u32 2147483647, %v488_v4  ;;  %v29_v6 = vand.u32 2139095040, %v488_v4  ;;  %vm28_vm14 = vcmp.lt.s32.totalorder %v488_v4, 0 }
  0x81   :  { %v202_v7 = vpop.permute.xlu0 %201 }
  0x82   :  { %v30_v8 = vshrl.u32 %v29_v6, 23  ;;  %v492_v9 = vmul.f32 %v396_v2, %v202_v7  ;;  %v33_v10 = vand.u32 8388607, %v26_v5  ;;  %vm27_vm15 = vcmp.le.f32.partialorder %v26_v5, 0.7853982 }
  0x84   :  { %v397_v11 = vadd.s32 4294967169, %v30_v8  ;;  %v214_v12 = vand.u32 2139095040, %v492_v9  ;;  %v34_v14 = vor.u32 8388608, %v33_v10  ;;  %v211_v16 = vand.u32 2147483647, %v492_v9 }
  0x86   :  { %v36_v13 = vadd.s32 1, %v397_v11  ;;  %v215_v15 = vshrl.u32 %v214_v12, 23  ;;  %v498_v21 = vshll.u32 %v34_v14, 8  ;;  %v218_v25 = vand.u32 8388607, %v211_v16 }
  0x88   :  { %vm37_vm0 = vcmp.gt.s32.totalorder %v36_v13, 0  ;;  %v402_v18 = vadd.s32 4294967169, %v215_v15  ;;  %v219_v55 = vor.u32 8388608, %v218_v25 }
  0x89   :  { %v38_v17 = vsel %vm37_vm0, %v36_v13, 0  ;;  %vm213_vm0 = vcmp.lt.s32.totalorder %v492_v9, 0 }
  0x8a   :  { %v39_v19 = vshrl.u32 %v38_v17, 5  ;;  %v40_v20 = vand.u32 31, %v38_v17  ;;  %v221_v26 = vadd.s32 1, %v402_v18  ;;  %v259_v6 = vshll.u32 %v219_v55, 8 }
  0x8c   :  { %v41_v22 = vsub.s32 32, %v40_v20  ;;  %v43_v24 = vshll.u32 %v457_v23, %v40_v20  ;;  %v46_v28 = vshll.u32 %v458_v27, %v40_v20  ;;  %v49_v30 = vshll.u32 %v459_v29, %v40_v20 }
  0x8d   :  { %v52_v32 = vshll.u32 %v460_v31, %v40_v20  ;;  %v55_v34 = vshll.u32 %v461_v33, %v40_v20  ;;  %vm58_vm1 = vcmp.lt.s32.totalorder %v39_v19, 1  ;;  %vm60_vm2 = vcmp.lt.s32.totalorder %v39_v19, 3 }
  0x8e   :  { %v44_v35 = vshrl.u32 %v458_v27, %v41_v22  ;;  %v47_v36 = vshrl.u32 %v459_v29, %v41_v22  ;;  %v50_v37 = vshrl.u32 %v460_v31, %v41_v22  ;;  %v42_v38 = vshrl.u32 %v457_v23, %v41_v22 }
  0x8f   :  { %v53_v39 = vshrl.u32 %v461_v33, %v41_v22  ;;  %v56_v41 = vshrl.u32 %v462_v40, %v41_v22  ;;  %vm222_vm3 = vcmp.gt.s32.totalorder %v221_v26, 0  ;;  %vm61_vm4 = vcmp.lt.s32.totalorder %v39_v19, 4 }
  0x90   :  { %v45_v42 = vor.u32 %v44_v35, %v43_v24  ;;  %v48_v43 = vor.u32 %v47_v36, %v46_v28  ;;  %v51_v44 = vor.u32 %v50_v37, %v49_v30  ;;  %v223_v47 = vsel %vm222_vm3, %v221_v26, 0 }
  0x91   :  { %v54_v45 = vor.u32 %v53_v39, %v52_v32  ;;  %v57_v46 = vor.u32 %v56_v41, %v55_v34  ;;  %vm59_vm5 = vcmp.lt.s32.totalorder %v39_v19, 2  ;;  %v225_v58 = vand.u32 31, %v223_v47 }
  0x92   :  { %v62_v48 = vsel %vm58_vm1, %v42_v38, %v45_v42  ;;  %v63_v49 = vsel %vm61_vm4, %v51_v44, 2102212464  ;;  %v66_v50 = vsel %vm58_vm1, %v45_v42, %v48_v43  ;;  %v70_v51 = vsel %vm58_vm1, %v48_v43, %v51_v44 }
  0x93   :  { %v64_v52 = vsel %vm60_vm2, %v48_v43, %v63_v49  ;;  %v67_v53 = vsel %vm61_vm4, %v54_v45, 920167782  ;;  %v71_v54 = vsel %vm61_vm4, %v57_v46, 1326507024  ;;  %v224_v2 = vshrl.u32 %v223_v47, 5 }
  0x94   :  { %v68_v56 = vsel %vm60_vm2, %v51_v44, %v67_v53  ;;  %v72_v57 = vsel %vm60_vm2, %v54_v45, %v71_v54  ;;  %v65_v59 = vsel %vm59_vm5, %v62_v48, %v64_v52  ;;  %v226_v3 = vsub.s32 32, %v225_v58 }
  0x95   :  { %v69_v60 = vsel %vm59_vm5, %v66_v50, %v68_v56  ;;  %v73_v61 = vsel %vm59_vm5, %v70_v51, %v72_v57  ;;  %v81_v7 = vmul.u32 %v498_v21, %v65_v59  ;;  %v228_v8 = vshll.u32 %v457_v23, %v225_v58 }
  0x96   :  { %v511_v62 = vmul.u32.u64.low %v498_v21, %v73_v61  ;;  %v512_v63 = vmul.u32.u64.high %v498_v21, %v73_v61, %v511_v62  ;;  %v515_v0 = vmul.u32.u64.low %v498_v21, %v69_v60  ;;  %v516_v1 = vmul.u32.u64.high %v498_v21, %v69_v60, %v515_v0 }
  0x97   :  { %v231_v10 = vshll.u32 %v458_v27, %v225_v58  ;;  %v234_v11 = vshll.u32 %v459_v29, %v225_v58  ;;  %v229_v12 = vshrl.u32 %v458_v27, %v226_v3  ;;  %v232_v13 = vshrl.u32 %v459_v29, %v226_v3 }
  0x98   :  { %v235_v14 = vshrl.u32 %v460_v31, %v226_v3  ;;  %v237_v15 = vshll.u32 %v460_v31, %v225_v58  ;;  %vm83_vm6 = vc.u32 %v512_v63, %v515_v0  ;;  %v84_v17 = vadd.s32 1, %v516_v1 }
  0x99   :  { %v238_v18 = vshrl.u32 %v461_v33, %v226_v3  ;;  %v240_v19 = vshll.u32 %v461_v33, %v225_v58  ;;  %v230_v20 = vor.u32 %v229_v12, %v228_v8  ;;  %v233_v22 = vor.u32 %v232_v13, %v231_v10 }
  0x9a   :  { %v236_v24 = vor.u32 %v235_v14, %v234_v11  ;;  %v241_v25 = vshrl.u32 %v462_v40, %v226_v3  ;;  %v85_v21 = vsel %vm83_vm6, %v84_v17, %v516_v1  ;;  %vm243_vm7 = vcmp.lt.s32.totalorder %v224_v2, 1 }
  0x9b   :  { %v239_v26 = vor.u32 %v238_v18, %v237_v15  ;;  %vm246_vm8 = vcmp.lt.s32.totalorder %v224_v2, 4  ;;  %v86_v27 = vadd.s32 %v85_v21, %v81_v7  ;;  %vm245_vm9 = vcmp.lt.s32.totalorder %v224_v2, 3 }
  0x9c   :  { %v242_v28 = vor.u32 %v241_v25, %v240_v19  ;;  %v248_v29 = vsel %vm246_vm8, %v236_v24, 2102212464  ;;  %v227_v30 = vshrl.u32 %v457_v23, %v226_v3  ;;  %v251_v31 = vsel %vm243_vm7, %v230_v20, %v233_v22 }
  0x9d   :  { %v252_v32 = vsel %vm246_vm8, %v239_v26, 920167782  ;;  %v255_v34 = vsel %vm243_vm7, %v233_v22, %v236_v24  ;;  %v87_v35 = vadd.s32 536870912, %v86_v27  ;;  %vm244_vm10 = vcmp.lt.s32.totalorder %v224_v2, 2 }
  0x9e   :  { %v253_v33 = vsel %vm245_vm9, %v236_v24, %v252_v32  ;;  %v256_v36 = vsel %vm246_vm8, %v242_v28, 1326507024  ;;  %v247_v37 = vsel %vm243_vm7, %v227_v30, %v230_v20  ;;  %v249_v38 = vsel %vm245_vm9, %v233_v22, %v248_v29 }
  0x9f   :  { %v254_v39 = vsel %vm244_vm10, %v251_v31, %v253_v33  ;;  %v257_v40 = vsel %vm245_vm9, %v239_v26, %v256_v36  ;;  %v88_v41 = vshrl.u32 %v87_v35, 30  ;;  %v250_v47 = vsel %vm244_vm10, %v247_v37, %v249_v38 }
  0xa0   :  { %v258_v42 = vsel %vm244_vm10, %v255_v34, %v257_v40  ;;  %v526_v43 = vmul.u32.u64.low %v259_v6, %v254_v39  ;;  %v527_v44 = vmul.u32.u64.high %v259_v6, %v254_v39, %v526_v43  ;;  %v266_v50 = vmul.u32 %v259_v6, %v250_v47 }
  0xa1   :  { %v529_v45 = vmul.u32.u64.low %v259_v6, %v258_v42  ;;  %v530_v46 = vmul.u32.u64.high %v259_v6, %v258_v42, %v529_v45  ;;  %v89_v23 = vshll.u32 %v88_v41, 30  ;;  %v82_v62 = vadd.s32 %v515_v0, %v512_v63 }
  0xa2   :  { %v269_v49 = vadd.s32 1, %v527_v44  ;;  %v112_v25 = vsub.s32 4, %v88_v41  ;;  %v463_v40 = vmov 1966171168   ;;  %vm548_vm1 = vcmp.le.f32.partialorder %v211_v16, 0.7853982 }
  0xa3   :  { %v90_v48 = vsub.s32 %v86_v27, %v89_v23  ;;  %vm268_vm11 = vc.u32 %v530_v46, %v526_v43  ;;  %v267_v22 = vadd.s32 %v526_v43, %v530_v46  ;;  %v133_v42 = vunpack.c.l.s4 %v463_v40 }
  0xa4   :  { %v270_v52 = vsel %vm268_vm11, %v269_v49, %v527_v44  ;;  %v113_v32 = vsel %vm28_vm14, %v112_v25, %v88_v41  ;;  %v135_v43 = vlaneseq  ;;  %vm118_vm5 = vweird.f32 %v488_v4 }
  0xa5   :  { %v92_v51 = vsub.s32 0, %v90_v48  ;;  %v271_v53 = vadd.s32 %v270_v52, %v266_v50  ;;  %v115_v36 = vsel %vm27_vm15, 0, %v113_v32  ;;  %v134_v23 = vunpack.c.0.s8 %v133_v42 }
  0xa6   :  { %v119_v38 = vadd.s32 3, %v115_v36  ;;  %v136_v47 = vshrl.u32 %v135_v43, 7  ;;  %vm188_vm6 = vcmask 122880   ;;  %vm303_vm10 = vweird.f32 %v492_v9 }
  0xa7   :  { %v398_v54 = vmin.u32 %v92_v51, %v90_v48  ;;  %v272_v55 = vadd.s32 536870912, %v271_v53 }
  0xa8   :  { %v120_v45 = vand.u32 3, %v119_v38  ;;  %v137_v52 = vsub.s32 %v134_v23, %v136_v47 }
  0xa9   :  { %v94_v56 = vclz %v398_v54  ;;  %v535_v57 = vshrl.u32 %v272_v55, 30 }
  0xaa   :  { %vm125_vm2 = vcmp.eq.s32.totalorder %v120_v45, 2  ;;  %vm122_vm3 = vcmp.eq.s32.totalorder %v120_v45, 0  ;;  %vm121_vm4 = vcmp.lt.s32.totalorder %v120_v45, 2 }
  0xab   :  { %v399_v58 = vadd.s32 4294967294, %v94_v56  ;;  %v274_v59 = vshll.u32 %v535_v57, 30  ;;  %v297_v46 = vsub.s32 4, %v535_v57 }
  0xad   :  { %vm400_vm12 = vcmp.lt.s32.totalorder %v399_v58, 0  ;;  %v275_v61 = vsub.s32 %v271_v53, %v274_v59  ;;  %v298_v16 = vsel %vm213_vm0, %v297_v46, %v535_v57 }
  0xae   :  { %v97_v60 = vsel %vm400_vm12, 0, %v399_v58  ;;  %v300_v56 = vsel %vm548_vm1, 0, %v298_v16 }
  0xaf   :  { %v98_v1 = vsub.s32 32, %v97_v60  ;;  %v102_v2 = vsub.s32 4294967266, %v97_v60  ;;  %v277_v3 = vsub.s32 0, %v275_v61  ;;  %v99_v6 = vshll.u32 %v90_v48, %v97_v60 }
  0xb1   :  { %v100_v7 = vshrl.u32 %v82_v62, %v98_v1  ;;  %v103_v8 = vadd.s32 127, %v102_v2  ;;  %v403_v10 = vmin.u32 %v277_v3, %v275_v61 }
  0xb3   :  { %v101_v11 = vor.u32 %v100_v7, %v99_v6  ;;  %v104_v12 = vshll.u32 %v103_v8, 23  ;;  %v279_v13 = vclz %v403_v10 }
  0xb5   :  { %v105_v14 = vor.u32 4788187, %v104_v12  ;;  %v404_v15 = vadd.s32 4294967294, %v279_v13  ;;  %v108_v18 = vcvt.s32.f32 %v101_v11 }
  0xb7   :  { %v106_v17 = vand.u32 2147483647, %v105_v14  ;;  %vm405_vm13 = vcmp.lt.s32.totalorder %v404_v15, 0 }
  0xb8   :  { %v282_v20 = vsel %vm405_vm13, 0, %v404_v15 }
  0xb9   :  { %v109_v19 = vmul.f32 %v108_v18, %v106_v17  ;;  %v283_v63 = vsub.s32 32, %v282_v20  ;;  %v287_v0 = vsub.s32 4294967266, %v282_v20  ;;  %v284_v21 = vshll.u32 %v275_v61, %v282_v20 }
  0xba   :  { %v304_v61 = vand.u32 3, %v300_v56 }
  0xbb   :  { %v110_v24 = vxor.u32 2147483648, %v109_v19  ;;  %v285_v26 = vshrl.u32 %v267_v22, %v283_v63  ;;  %v288_v27 = vadd.s32 127, %v287_v0 }
  0xbc   :  { %vm309_vm7 = vcmp.eq.s32.totalorder %v304_v61, 2  ;;  %vm306_vm8 = vcmp.eq.s32.totalorder %v304_v61, 0  ;;  %vm305_vm9 = vcmp.lt.s32.totalorder %v304_v61, 2 }
  0xbd   :  { %v111_v28 = vsel %vm28_vm14, %v110_v24, %v109_v19  ;;  %v286_v30 = vor.u32 %v285_v26, %v284_v21  ;;  %v289_v31 = vshll.u32 %v288_v27, 23 }
  0xbe   :  { %v114_v29 = vsel %vm27_vm15, %v488_v4, %v111_v28 }
  0xbf   :  { %426 = vcosq.f32 %v114_v29  ;;  %v290_v34 = vor.u32 4788187, %v289_v31  ;;  %v293_v33 = vcvt.s32.f32 %v286_v30 }
  0xc0   :  { %428 = vsinq.f32 %v114_v29 }
  0xc1   :  { %v291_v35 = vand.u32 2147483647, %v290_v34 }
  0xc3   :  { %v294_v37 = vmul.f32 %v293_v33, %v291_v35 }
  0xc5   :  { %v295_v39 = vxor.u32 2147483648, %v294_v37 }
  0xc7   :  { %v296_v41 = vsel %vm213_vm0, %v295_v39, %v294_v37 }
  0xc8   :  { %v299_v44 = vsel %vm548_vm1, %v492_v9, %v296_v41 }
  0xc9   :  { %430 = vcosq.f32 %v299_v44 }
  0xca   :  { %432 = vsinq.f32 %v299_v44 }
  0xcc   :  { %v427_v48 = vpop.eup %426 }
  0xcd   :  { %v429_v49 = vpop.eup %428  ;;  %v126_v50 = vxor.u32 2147483648, %v427_v48 }
  0xce   :  { %v123_v51 = vxor.u32 2147483648, %v429_v49 }
  0xcf   :  { %v127_v53 = vsel %vm125_vm2, %v126_v50, %v429_v49 }
  0xd0   :  { %v124_v54 = vsel %vm122_vm3, %v427_v48, %v123_v51 }
  0xd1   :  { %v128_v55 = vsel %vm121_vm4, %v124_v54, %v127_v53 }
  0xd2   :  { %v129_v58 = vsel %vm118_vm5, nan, %v128_v55 }
  0xd3   :  { %v131_v59 = vcombine.high %v129_v58, %v129_v58  ;;  %v138_v60 = vrot.slane %v129_v58, %v137_v52 }
  0xd5   :  { %v145_v62 = vrot.slane %v131_v59, %v137_v52  ;;  %v146_v1 = vcombine.high %v138_v60, %v138_v60  ;;  %v154_v2 = vrot.slane %v138_v60, %v137_v52 }
  0xd6   :  { %v431_v57 = vpop.eup %430 }
  0xd7   :  { %v147_v3 = vcombine.high %v145_v62, %v145_v62  ;;  %v161_v6 = vrot.slane %v145_v62, %v137_v52  ;;  %v168_v7 = vrot.slane %v146_v1, %v137_v52  ;;  %v176_v8 = vcombine.high %v154_v2, %v154_v2  ;;  %189 = vst.msk [vmem:[#allocation2] sm:$0x1] %vm188_vm6, %v154_v2  ;;  %v433_v4 = vpop.eup %432 }
  0xd8   :  { %v310_v10 = vxor.u32 2147483648, %v431_v57  ;;  %v307_v14 = vxor.u32 2147483648, %v433_v4 }
  0xd9   :  { %v175_v11 = vrot.slane %v147_v3, %v137_v52  ;;  %v177_v12 = vcombine.high %v161_v6, %v161_v6  ;;  %v178_v13 = vcombine.high %v168_v7, %v168_v7  ;;  %190 = vst.msk [vmem:[#allocation2 + $0x2] sm:$0x1] %vm188_vm6, %v168_v7  ;;  %191 = vst.msk [vmem:[#allocation2 + $0x4] sm:$0x1] %vm188_vm6, %v176_v8 }
  0xda   :  { %193 = vst.msk [vmem:[#allocation2 + $0x8] sm:$0x1] %vm188_vm6, %v161_v6  ;;  %v311_v15 = vsel %vm309_vm7, %v310_v10, %v433_v4  ;;  %v308_v18 = vsel %vm306_vm8, %v431_v57, %v307_v14 }
  0xdb   :  { %v179_v17 = vcombine.high %v175_v11, %v175_v11  ;;  %192 = vst.msk [vmem:[#allocation2 + $0x6] sm:$0x1] %vm188_vm6, %v178_v13  ;;  %194 = vst.msk [vmem:[#allocation2 + $0xa] sm:$0x1] %vm188_vm6, %v175_v11  ;;  %v312_v19 = vsel %vm305_vm9, %v308_v18, %v311_v15 }
  0xdc   :  { %195 = vst.msk [vmem:[#allocation2 + $0xc] sm:$0x1] %vm188_vm6, %v177_v12  ;;  %v313_v20 = vsel %vm303_vm10, nan, %v312_v19 }
  0xdd   :  { %196 = vst.msk [vmem:[#allocation2 + $0xe] sm:$0x1] %vm188_vm6, %v179_v17  ;;  %v315_v22 = vcombine.high %v313_v20, %v313_v20  ;;  %v322_v63 = vrot.slane %v313_v20, %v137_v52 }
  0xdf   :  { %v329_v0 = vrot.slane %v315_v22, %v137_v52  ;;  %v330_v24 = vcombine.high %v322_v63, %v322_v63  ;;  %v338_v25 = vrot.slane %v322_v63, %v137_v52 }
  0xe1   :  { %v331_v21 = vcombine.high %v329_v0, %v329_v0  ;;  %v345_v26 = vrot.slane %v329_v0, %v137_v52  ;;  %v352_v27 = vrot.slane %v330_v24, %v137_v52  ;;  %v360_v28 = vcombine.high %v338_v25, %v338_v25  ;;  %372 = vst.msk [vmem:[#allocation2 + $0x1] sm:$0x1] %vm188_vm6, %v338_v25 }
  0xe3   :  { %v359_v29 = vrot.slane %v331_v21, %v137_v52  ;;  %v361_v30 = vcombine.high %v345_v26, %v345_v26  ;;  %v362_v9 = vcombine.high %v352_v27, %v352_v27  ;;  %373 = vst.msk [vmem:[#allocation2 + $0x3] sm:$0x1] %vm188_vm6, %v352_v27  ;;  %374 = vst.msk [vmem:[#allocation2 + $0x5] sm:$0x1] %vm188_vm6, %v360_v28 }
  0xe4   :  { %376 = vst.msk [vmem:[#allocation2 + $0x9] sm:$0x1] %vm188_vm6, %v345_v26 }
  0xe5   :  { %v363_v31 = vcombine.high %v359_v29, %v359_v29  ;;  %375 = vst.msk [vmem:[#allocation2 + $0x7] sm:$0x1] %vm188_vm6, %v362_v9  ;;  %377 = vst.msk [vmem:[#allocation2 + $0xb] sm:$0x1] %vm188_vm6, %v359_v29 }
  0xe6   :  { %378 = vst.msk [vmem:[#allocation2 + $0xd] sm:$0x1] %vm188_vm6, %v361_v30 }
  0xe7   :  { %379 = vst.msk [vmem:[#allocation2 + $0xf] sm:$0x1] %vm188_vm6, %v363_v31 }
  0xe8   :  { %445 = shalt.err (!%p442_p4)
}
  0xe9   :  { %s465_s14 = smov 32   ;;  %s466_s15 = smov 2  }
  0xea   :  { %391 = dma.vmem_to_hbm [thread:$0]  %s386_s1, 256, %s582_s2, [#allocation3], %s465_s14, %s465_s14, %s466_s15  }
  0xeb   :  { %454 = dma.done.wait [#allocation3], 256  }
  0xec   :  { %455 = vsyncadd [#allocation3], 4294967040 }
  0xed   :  { %395 = vsyncpa [#allocation3], 1 }

</bundles_post_ra>
